<compile_context>
chip_gen: v7x
topology: tpu7x:2x2x1
jax: 0.10.0
libtpu: 0.0.40
codegen_flags: <defaults>
</compile_context>

<pallas_src>
import jax
import jax.numpy as jnp
from jax import lax
from jax.experimental import pallas as pl
from jax.experimental.pallas import tpu as pltpu

# ----- config (small, consistent with the module's __init__) -----------------
EMBED_DIM = 16
N_ACTIONS = 4
GRU_DIM = 32
HIDDEN_DIM = 32
LATENT_DIM = GRU_DIM + HIDDEN_DIM            # 64
ENSEMBLE = 2
BATCH = 4                                     # per-ensemble-member batch
N_ROWS = ENSEMBLE * BATCH                     # 8 rows == 8 sublanes (one vreg)
IN_X = EMBED_DIM + N_ACTIONS                  # 20  (GRU input / x feature dim)
L0_IN = GRU_DIM + IN_X                        # 52  (first ensemble layer input)
OUT_DIM = EMBED_DIM + 1                       # 17  (last ensemble layer output)
LANES = 128                                   # = ENSEMBLE*LATENT_DIM = 4*GRU_DIM

assert ENSEMBLE * LATENT_DIM == LANES
assert 4 * GRU_DIM == LANES
assert GRU_DIM + OUT_DIM <= LATENT_DIM        # pred window fits beside h window

# Ensemble MLP layer sizes: (in, out) for the 5 BnnLayers
LAYER_DIMS = [
    (L0_IN, LATENT_DIM),
    (LATENT_DIM, LATENT_DIM),
    (LATENT_DIM, LATENT_DIM),
    (LATENT_DIM, LATENT_DIM),
    (LATENT_DIM, OUT_DIM),
]


def _pad8(n):
    return ((n + 7) // 8) * 8


# Weight-slab sublane layout (all offsets 8-aligned -> static slices are clean).
OFF_WGX = 0                                    # GRU x-part   (20,128)
OFF_WGH = OFF_WGX + _pad8(IN_X)                # GRU h-part   (32,128) @ 24
OFF_W1X = OFF_WGH + _pad8(GRU_DIM)             # L1 x-part    (20,128) @ 56
OFF_W1H = OFF_W1X + _pad8(IN_X)                # L1 h-part    (32,128) @ 80
OFF_W2 = OFF_W1H + _pad8(GRU_DIM)              # L2 blockdiag (128,128) @ 112
OFF_W3 = OFF_W2 + LANES                        # @ 240
OFF_W4 = OFF_W3 + LANES                        # @ 368
OFF_W5 = OFF_W4 + LANES                        # @ 496
W_ROWS = OFF_W5 + LANES                        # 624
B_ROWS = 8                                     # bias slab rows (one vreg)


# ----- Pallas kernel ----------------------------------------------------------
def bnn_transition_kernel(x_ref, h0_ref, w_ref, b_ref, out_ref, h_scr):
    t = pl.program_id(0)

    @pl.when(t == 0)
    def _():
        h_scr[...] = h0_ref[...]

    wdt = w_ref.dtype

    def mm(a, row_off, rows):
        # Static 8-aligned sublane slice of the VMEM-resident weight slab.
        w = w_ref[pl.ds(row_off, rows), :]
        return jnp.dot(a.astype(wdt), w, preferred_element_type=jnp.float32)

    x = x_ref[0]                                   # (8, IN_X) f32
    h = h_scr[...]                                 # (8, G)    f32
    bias = b_ref[...].astype(jnp.float32)          # (8, 128)  one vreg

    G = GRU_DIM
    # --- GRU cell, split into x-/h- matmuls (no lane concat).  The layer-1
    # x-part below has no dependency on the GRU, so its MXU latency hides
    # under the EUP sigmoid/tanh work.
    gx = mm(x, OFF_WGX, IN_X)                      # gates from x
    gh = mm(h, OFF_WGH, GRU_DIM)                   # gates from h_{t-1}
    a1x = mm(x, OFF_W1X, IN_X)                     # layer-1 x-part (GRU-free)

    g = gx + gh + bias[0:1, :]                     # [ r | z | gi_n | gh_n ]
    r = jax.nn.sigmoid(g[:, 0:G])
    z = jax.nn.sigmoid(g[:, G:2 * G])
    n = jnp.tanh(g[:, 2 * G:3 * G] + r * g[:, 3 * G:4 * G])
    h_new = (1.0 - z) * n + z * h                  # (8, G)

    # --- block-diagonal ensemble MLP (member e lives in lanes e*64:(e+1)*64).
    # Wrong-member windows hold nonzero bias-fed values; they stay isolated by
    # the block-diagonal packing and are never read by the wrapper.
    a = jnp.tanh(a1x + mm(h_new, OFF_W1H, GRU_DIM) + bias[1:2, :])
    a = jnp.tanh(mm(a, OFF_W2, LANES) + bias[2:3, :])
    a = jnp.tanh(mm(a, OFF_W3, LANES) + bias[3:4, :])
    a = mm(a, OFF_W4, LANES) + bias[4:5, :]
    a = mm(a, OFF_W5, LANES) + bias[5:6, :]        # preds at lanes [32+e*64,+17)

    # Carry hidden state; emit one lane-dense (8,128) slab per step:
    # lanes 0:G = h_t, member-e prediction at lanes [G + e*64, +OUT_DIM).
    h_scr[...] = h_new
    out_ref[0] = jnp.concatenate([h_new, a[:, G:]], axis=1)


# ----- parameter packing (done once, outside the kernel) ----------------------
def pack_params(p, weight_dtype=jnp.float32):
    """Pack raw GRU + per-member MLP params into one weight slab + one bias slab.

    weight_dtype=jnp.bfloat16 is the recommended setting on v6e/v7x (halves
    weight DMA/VMEM); keep float32 on v5e.
    """
    G = GRU_DIM
    w = jnp.zeros((W_ROWS, LANES), jnp.float32)
    b = jnp.zeros((B_ROWS, LANES), jnp.float32)

    # GRU, packed gate columns [ r | z | gi_n | gh_n ].
    wih, whh = p["wih_t"], p["whh_t"]              # (IN_X,3G), (G,3G)
    bih, bhh = p["bih"], p["bhh"]                  # (1,3G)
    w = w.at[OFF_WGX:OFF_WGX + IN_X, 0:3 * G].set(wih)
    w = w.at[OFF_WGH:OFF_WGH + G, 0:2 * G].set(whh[:, 0:2 * G])
    w = w.at[OFF_WGH:OFF_WGH + G, 3 * G:4 * G].set(whh[:, 2 * G:3 * G])
    b = b.at[0, 0:2 * G].set((bih[:, 0:2 * G] + bhh[:, 0:2 * G])[0])
    b = b.at[0, 2 * G:3 * G].set(bih[0, 2 * G:3 * G])
    b = b.at[0, 3 * G:4 * G].set(bhh[0, 2 * G:3 * G])

    # Layer 1: both members' (52,64) blocks over the SAME 52 input rows
    # (feat = [h_new | x]); split into h-part / x-part sub-blocks.
    for e in range(ENSEMBLE):
        w1e = p["w1"][e]                           # (52, 64)
        c0, c1 = e * LATENT_DIM, (e + 1) * LATENT_DIM
        w = w.at[OFF_W1H:OFF_W1H + G, c0:c1].set(w1e[0:G, :])
        w = w.at[OFF_W1X:OFF_W1X + IN_X, c0:c1].set(w1e[G:, :])
        b = b.at[1, c0:c1].set(p["b1"][e, 0])

    # Layers 2-4: block-diagonal (128,128).
    for li, off in ((2, OFF_W2), (3, OFF_W3), (4, OFF_W4)):
        for e in range(ENSEMBLE):
            c0, c1 = e * LATENT_DIM, (e + 1) * LATENT_DIM
            w = w.at[off + c0:off + c1, c0:c1].set(p[f"w{li}"][e])
            b = b.at[li, c0:c1].set(p[f"b{li}"][e, 0])

    # Layer 5: member e's (64,17) block routed into output lanes
    # [G + e*LATENT_DIM, +OUT_DIM); lanes 0:G stay exactly zero.
    for e in range(ENSEMBLE):
        r0 = OFF_W5 + e * LATENT_DIM
        col = G + e * LATENT_DIM
        w = w.at[r0:r0 + LATENT_DIM, col:col + OUT_DIM].set(p["w5"][e])
        b = b.at[5, col:col + OUT_DIM].set(p["b5"][e, 0])

    return {"w": w.astype(weight_dtype), "b": b.astype(weight_dtype)}


# ----- wrappers ----------------------------------------------------------------
def _pallas_rollout(xs, h0, w_slab, b_slab):
    """xs: (T, N, IN_X), h0: (N, G) -> output slab (T, N, 128)."""
    T = xs.shape[0]
    itemsize = jnp.dtype(w_slab.dtype).itemsize
    flops = int(T * 2 * N_ROWS * (2 * (IN_X + GRU_DIM) + 4 * LANES) * LANES)
    transcendentals = int(T * N_ROWS * (3 * GRU_DIM + 3 * LANES))
    bytes_accessed = int((W_ROWS + B_ROWS) * LANES * itemsize
                         + N_ROWS * GRU_DIM * 4
                         + T * N_ROWS * (IN_X + LANES) * 4)

    grid_spec = pltpu.PrefetchScalarGridSpec(
        num_scalar_prefetch=0,
        grid=(T,),
        in_specs=[
            pl.BlockSpec((1, N_ROWS, IN_X), lambda t: (t, 0, 0)),   # x_t streams
            pl.BlockSpec((N_ROWS, GRU_DIM), lambda t: (0, 0)),      # h0 (once)
            pl.BlockSpec((W_ROWS, LANES), lambda t: (0, 0)),        # weights (once)
            pl.BlockSpec((B_ROWS, LANES), lambda t: (0, 0)),        # biases (once)
        ],
        out_specs=pl.BlockSpec((1, N_ROWS, LANES), lambda t: (t, 0, 0)),
        scratch_shapes=[pltpu.VMEM((N_ROWS, GRU_DIM), jnp.float32)],
    )
    return pl.pallas_call(
        bnn_transition_kernel,
        grid_spec=grid_spec,
        out_shape=jax.ShapeDtypeStruct((T, N_ROWS, LANES), jnp.float32),
        compiler_params=pltpu.CompilerParams(
            dimension_semantics=("arbitrary",)),
        cost_estimate=pl.CostEstimate(flops=flops,
                                      transcendentals=transcendentals,
                                      bytes_accessed=bytes_accessed),
    )(xs, h0, w_slab, b_slab)


def bnn_transition_rollout(xs, hidden, packed):
    """Multi-step rollout: xs (T,N,IN_X), hidden (N,G) -> (preds (T,N,OUT), h (T,N,G))."""
    slab = _pallas_rollout(xs, hidden, packed["w"], packed["b"])
    h_seq = slab[:, :, :GRU_DIM]
    preds = jnp.concatenate(
        [slab[:, e * BATCH:(e + 1) * BATCH,
              GRU_DIM + e * LATENT_DIM:GRU_DIM + e * LATENT_DIM + OUT_DIM]
         for e in range(ENSEMBLE)], axis=1)
    return preds, h_seq


def bnn_transition_forward(x, hidden, packed):
    """Single-step forward, exactly the module's forward(x, hidden) -> (pred, h')."""
    preds, hs = bnn_transition_rollout(x[None], hidden, packed)
    return preds[0], hs[0]


# ----- pure-JAX reference (mirrors the PyTorch math, raw params) ---------------
def reference_forward(x, hidden, params):
    gi = x @ params["wih_t"] + params["bih"]
    gh = hidden @ params["whh_t"] + params["bhh"]
    G = GRU_DIM
    r = jax.nn.sigmoid(gi[:, 0:G] + gh[:, 0:G])
    z = jax.nn.sigmoid(gi[:, G:2 * G] + gh[:, G:2 * G])
    n = jnp.tanh(gi[:, 2 * G:3 * G] + r * gh[:, 2 * G:3 * G])
    h_new = (1.0 - z) * n + z * hidden

    feat = jnp.concatenate([h_new, x], axis=1)
    a = feat.reshape(ENSEMBLE, BATCH, L0_IN)

    def ens(a, w, b, act):
        out = jnp.einsum("ebi,eio->ebo", a, w) + b
        return jnp.tanh(out) if act else out

    a = ens(a, params["w1"], params["b1"], True)
    a = ens(a, params["w2"], params["b2"], True)
    a = ens(a, params["w3"], params["b3"], True)
    a = ens(a, params["w4"], params["b4"], False)
    a = ens(a, params["w5"], params["b5"], False)
    return a.reshape(ENSEMBLE * BATCH, OUT_DIM), h_new


def reference_rollout(xs, h0, params):
    def step(h, x):
        pred, h_new = reference_forward(x, h, params)
        return h_new, (pred, h_new)

    _, (preds, hs) = lax.scan(step, h0, xs)
    return preds, hs


# ----- deterministic parameter init --------------------------------------------
def init_params(key):
    ks = jax.random.split(key, 4 + 2 * len(LAYER_DIMS))
    s = 1.0 / jnp.sqrt(jnp.float32(GRU_DIM))
    params = {
        # stored pre-transposed: (in, 3*gru), gate order [r | z | n]
        "wih_t": jax.random.uniform(ks[0], (IN_X, 3 * GRU_DIM), jnp.float32, -s, s),
        "whh_t": jax.random.uniform(ks[1], (GRU_DIM, 3 * GRU_DIM), jnp.float32, -s, s),
        "bih": jax.random.uniform(ks[2], (1, 3 * GRU_DIM), jnp.float32, -s, s),
        "bhh": jax.random.uniform(ks[3], (1, 3 * GRU_DIM), jnp.float32, -s, s),
    }
    for i, (din, dout) in enumerate(LAYER_DIMS):
        sw = 1.0 / jnp.sqrt(jnp.float32(din))
        params[f"w{i + 1}"] = jax.random.uniform(
            ks[4 + 2 * i], (ENSEMBLE, din, dout), jnp.float32, -sw, sw)
        params[f"b{i + 1}"] = jax.random.uniform(
            ks[5 + 2 * i], (ENSEMBLE, 1, dout), jnp.float32, -sw, sw)
    return params


if __name__ == "__main__":
    key = jax.random.PRNGKey(0)
    kp, kx, kh = jax.random.split(key, 3)
    params = init_params(kp)
    packed = pack_params(params)                      # one-time weight packing (f32)

    N = ENSEMBLE * BATCH
    T = 8
    xs = jax.random.normal(kx, (T, N, IN_X), jnp.float32)
    h0 = jax.random.normal(kh, (N, GRU_DIM), jnp.float32)

    # --- multi-step rollout: grid over T, weights VMEM-resident, h carried ---
    pred_seq, h_seq = bnn_transition_rollout(xs, h0, packed)
    jax.block_until_ready((pred_seq, h_seq))
    pred_ref_seq, h_ref_seq = reference_rollout(xs, h0, params)
    assert pred_seq.shape == (T, N, OUT_DIM) and h_seq.shape == (T, N, GRU_DIM)
    # Both sides use default (bf16-pass) MXU precision with different packings,
    # so allow modest accumulated divergence over the recurrence.
    assert jnp.allclose(h_seq, h_ref_seq, rtol=1e-2, atol=1e-2), "rollout hidden mismatch"
    assert jnp.allclose(pred_seq, pred_ref_seq, rtol=1e-2, atol=1e-2), "rollout pred mismatch"

    # --- single-step forward == module.forward semantics ---
    pred1, h1 = bnn_transition_forward(xs[0], h0, packed)
    jax.block_until_ready((pred1, h1))
    pred1_ref, h1_ref = reference_forward(xs[0], h0, params)
    assert pred1.shape == (N, OUT_DIM) and h1.shape == (N, GRU_DIM)
    assert jnp.allclose(h1, h1_ref, rtol=2e-3, atol=2e-3), "hidden mismatch"
    assert jnp.allclose(pred1, pred1_ref, rtol=2e-3, atol=2e-3), "prediction mismatch"

    # --- bf16 weight packing (v6e/v7x option): halves weight DMA/VMEM ---
    packed_bf16 = pack_params(params, weight_dtype=jnp.bfloat16)
    pred_bf, h_bf = bnn_transition_forward(xs[0], h0, packed_bf16)
    jax.block_until_ready((pred_bf, h_bf))
    assert jnp.allclose(h_bf, h1_ref, rtol=1e-1, atol=1e-1), "bf16 hidden mismatch"
    assert jnp.allclose(pred_bf, pred1_ref, rtol=1e-1, atol=1e-1), "bf16 pred mismatch"

    print("KERNEL_OK")
</pallas_src>

<mosaic_0001>
module attributes {stable_mosaic.version = 11 : i64} {
  func.func @bnn_transition_kernel(%arg0: i32, %arg1: memref<1x8x20xf32, #tpu.memory_space<vmem>>, %arg2: memref<8x32xf32, #tpu.memory_space<vmem>>, %arg3: memref<624x128xf32, #tpu.memory_space<vmem>>, %arg4: memref<8x128xf32, #tpu.memory_space<vmem>>, %arg5: memref<1x8x128xf32, #tpu.memory_space<vmem>>, %arg6: memref<8x32xf32, #tpu.memory_space<vmem>>) attributes {dimension_semantics = [#tpu.dimension_semantics<arbitrary>], iteration_bounds = array<i64: 8>, scalar_prefetch = 0 : i64, scratch_operands = 1 : i64, tpu.core_type = #tpu.core_type<tc>, window_params = [{transform_indices = @transform_0, window_bounds = array<i64: 1, 8, 20>}, {pipeline_mode = #tpu.pipeline_mode<synchronous>, transform_indices = @transform_1, window_bounds = array<i64: 8, 32>}, {pipeline_mode = #tpu.pipeline_mode<synchronous>, transform_indices = @transform_2, window_bounds = array<i64: 624, 128>}, {pipeline_mode = #tpu.pipeline_mode<synchronous>, transform_indices = @transform_3, window_bounds = array<i64: 8, 128>}, {transform_indices = @transform_4, window_bounds = array<i64: 1, 8, 128>}]} {
    %c0_i32 = arith.constant 0 : i32
    %0 = arith.cmpi eq, %arg0, %c0_i32 : i32
    %1 = arith.extui %0 : i1 to i32
    %c0_i32_0 = arith.constant 0 : i32
    %2 = arith.cmpi ne, %1, %c0_i32_0 : i32
    scf.if %2 {
      %c0_31 = arith.constant 0 : index
      %c0_32 = arith.constant 0 : index
      %74 = vector.load %arg2[%c0_31, %c0_32] : memref<8x32xf32, #tpu.memory_space<vmem>>, vector<8x32xf32>
      %c0_33 = arith.constant 0 : index
      %c0_34 = arith.constant 0 : index
      %75 = vector.load %arg6[%c0_33, %c0_34] : memref<8x32xf32, #tpu.memory_space<vmem>>, vector<8x32xf32>
      tpu.vector_store %arg6[%c0_33, %c0_34], %74 {strides = array<i32>} : memref<8x32xf32, #tpu.memory_space<vmem>>, vector<8x32xf32>,
    } else {
    }
    %c0 = arith.constant 0 : index
    %c0_1 = arith.constant 0 : index
    %c0_2 = arith.constant 0 : index
    %3 = vector.load %arg1[%c0, %c0_1, %c0_2] : memref<1x8x20xf32, #tpu.memory_space<vmem>>, vector<1x8x20xf32>
    %4 = vector.shape_cast %3 : vector<1x8x20xf32> to vector<8x20xf32>
    %c0_3 = arith.constant 0 : index
    %c0_4 = arith.constant 0 : index
    %5 = vector.load %arg6[%c0_3, %c0_4] : memref<8x32xf32, #tpu.memory_space<vmem>>, vector<8x32xf32>
    %c0_5 = arith.constant 0 : index
    %c0_6 = arith.constant 0 : index
    %6 = vector.load %arg4[%c0_5, %c0_6] : memref<8x128xf32, #tpu.memory_space<vmem>>, vector<8x128xf32>
    %c0_7 = arith.constant 0 : index
    %c0_8 = arith.constant 0 : index
    %7 = vector.load %arg3[%c0_7, %c0_8] : memref<624x128xf32, #tpu.memory_space<vmem>>, vector<20x128xf32>
    %cst = arith.constant dense<0.000000e+00> : vector<8x128xf32>
    %8 = tpu.matmul %4, %7, %cst {dimension_numbers = #tpu.dot_dimension_numbers<[1], [0], [0], [1], [0, 0, 1, 1], [], []>} : vector<8x20xf32>, vector<20x128xf32>, vector<8x128xf32> -> vector<8x128xf32>
    %c24 = arith.constant 24 : index
    %c0_9 = arith.constant 0 : index
    %9 = vector.load %arg3[%c24, %c0_9] : memref<624x128xf32, #tpu.memory_space<vmem>>, vector<32x128xf32>
    %cst_10 = arith.constant dense<0.000000e+00> : vector<8x128xf32>
    %10 = tpu.matmul %5, %9, %cst_10 {dimension_numbers = #tpu.dot_dimension_numbers<[1], [0], [0], [1], [0, 0, 1, 1], [], []>} : vector<8x32xf32>, vector<32x128xf32>, vector<8x128xf32> -> vector<8x128xf32>
    %c56 = arith.constant 56 : index
    %c0_11 = arith.constant 0 : index
    %11 = vector.load %arg3[%c56, %c0_11] : memref<624x128xf32, #tpu.memory_space<vmem>>, vector<20x128xf32>
    %cst_12 = arith.constant dense<0.000000e+00> : vector<8x128xf32>
    %12 = tpu.matmul %4, %11, %cst_12 {dimension_numbers = #tpu.dot_dimension_numbers<[1], [0], [0], [1], [0, 0, 1, 1], [], []>} : vector<8x20xf32>, vector<20x128xf32>, vector<8x128xf32> -> vector<8x128xf32>
    %13 = arith.addf %8, %10 : vector<8x128xf32>
    %14 = vector.extract_strided_slice %6 {offsets = [0, 0], sizes = [1, 128], strides = [1, 1]} : vector<8x128xf32> to vector<1x128xf32>
    %15 = vector.broadcast %14 : vector<1x128xf32> to vector<8x128xf32>
    %16 = arith.addf %13, %15 : vector<8x128xf32>
    %17 = vector.extract_strided_slice %16 {offsets = [0, 0], sizes = [8, 32], strides = [1, 1]} : vector<8x128xf32> to vector<8x32xf32>
    %18 = arith.negf %17 : vector<8x32xf32>
    %19 = math.exp %18 : vector<8x32xf32>
    %cst_13 = arith.constant 1.000000e+00 : f32
    %20 = vector.broadcast %cst_13 : f32 to vector<8x32xf32>
    %21 = arith.addf %20, %19 : vector<8x32xf32>
    %22 = arith.divf %20, %21 : vector<8x32xf32>
    %23 = vector.extract_strided_slice %16 {offsets = [0, 32], sizes = [8, 32], strides = [1, 1]} : vector<8x128xf32> to vector<8x32xf32>
    %24 = arith.negf %23 : vector<8x32xf32>
    %25 = math.exp %24 : vector<8x32xf32>
    %cst_14 = arith.constant 1.000000e+00 : f32
    %26 = vector.broadcast %cst_14 : f32 to vector<8x32xf32>
    %27 = arith.addf %26, %25 : vector<8x32xf32>
    %28 = arith.divf %26, %27 : vector<8x32xf32>
    %29 = vector.extract_strided_slice %16 {offsets = [0, 64], sizes = [8, 32], strides = [1, 1]} : vector<8x128xf32> to vector<8x32xf32>
    %30 = vector.extract_strided_slice %16 {offsets = [0, 96], sizes = [8, 32], strides = [1, 1]} : vector<8x128xf32> to vector<8x32xf32>
    %31 = arith.mulf %22, %30 : vector<8x32xf32>
    %32 = arith.addf %29, %31 : vector<8x32xf32>
    %33 = math.tanh %32 : vector<8x32xf32>
    %cst_15 = arith.constant 1.000000e+00 : f32
    %34 = vector.broadcast %cst_15 : f32 to vector<8x32xf32>
    %35 = arith.subf %34, %28 : vector<8x32xf32>
    %36 = arith.mulf %35, %33 : vector<8x32xf32>
    %37 = arith.mulf %28, %5 : vector<8x32xf32>
    %38 = arith.addf %36, %37 : vector<8x32xf32>
    %c80 = arith.constant 80 : index
    %c0_16 = arith.constant 0 : index
    %39 = vector.load %arg3[%c80, %c0_16] : memref<624x128xf32, #tpu.memory_space<vmem>>, vector<32x128xf32>
    %cst_17 = arith.constant dense<0.000000e+00> : vector<8x128xf32>
    %40 = tpu.matmul %38, %39, %cst_17 {dimension_numbers = #tpu.dot_dimension_numbers<[1], [0], [0], [1], [0, 0, 1, 1], [], []>} : vector<8x32xf32>, vector<32x128xf32>, vector<8x128xf32> -> vector<8x128xf32>
    %41 = arith.addf %12, %40 : vector<8x128xf32>
    %42 = vector.extract_strided_slice %6 {offsets = [1, 0], sizes = [1, 128], strides = [1, 1]} : vector<8x128xf32> to vector<1x128xf32>
    %43 = vector.broadcast %42 : vector<1x128xf32> to vector<8x128xf32>
    %44 = arith.addf %41, %43 : vector<8x128xf32>
    %45 = math.tanh %44 : vector<8x128xf32>
    %c112 = arith.constant 112 : index
    %c0_18 = arith.constant 0 : index
    %46 = vector.load %arg3[%c112, %c0_18] : memref<624x128xf32, #tpu.memory_space<vmem>>, vector<128x128xf32>
    %cst_19 = arith.constant dense<0.000000e+00> : vector<8x128xf32>
    %47 = tpu.matmul %45, %46, %cst_19 {dimension_numbers = #tpu.dot_dimension_numbers<[1], [0], [0], [1], [0, 0, 1, 1], [], []>} : vector<8x128xf32>, vector<128x128xf32>, vector<8x128xf32> -> vector<8x128xf32>
    %48 = vector.extract_strided_slice %6 {offsets = [2, 0], sizes = [1, 128], strides = [1, 1]} : vector<8x128xf32> to vector<1x128xf32>
    %49 = vector.broadcast %48 : vector<1x128xf32> to vector<8x128xf32>
    %50 = arith.addf %47, %49 : vector<8x128xf32>
    %51 = math.tanh %50 : vector<8x128xf32>
    %c240 = arith.constant 240 : index
    %c0_20 = arith.constant 0 : index
    %52 = vector.load %arg3[%c240, %c0_20] : memref<624x128xf32, #tpu.memory_space<vmem>>, vector<128x128xf32>
    %cst_21 = arith.constant dense<0.000000e+00> : vector<8x128xf32>
    %53 = tpu.matmul %51, %52, %cst_21 {dimension_numbers = #tpu.dot_dimension_numbers<[1], [0], [0], [1], [0, 0, 1, 1], [], []>} : vector<8x128xf32>, vector<128x128xf32>, vector<8x128xf32> -> vector<8x128xf32>
    %54 = vector.extract_strided_slice %6 {offsets = [3, 0], sizes = [1, 128], strides = [1, 1]} : vector<8x128xf32> to vector<1x128xf32>
    %55 = vector.broadcast %54 : vector<1x128xf32> to vector<8x128xf32>
    %56 = arith.addf %53, %55 : vector<8x128xf32>
    %57 = math.tanh %56 : vector<8x128xf32>
    %c368 = arith.constant 368 : index
    %c0_22 = arith.constant 0 : index
    %58 = vector.load %arg3[%c368, %c0_22] : memref<624x128xf32, #tpu.memory_space<vmem>>, vector<128x128xf32>
    %cst_23 = arith.constant dense<0.000000e+00> : vector<8x128xf32>
    %59 = tpu.matmul %57, %58, %cst_23 {dimension_numbers = #tpu.dot_dimension_numbers<[1], [0], [0], [1], [0, 0, 1, 1], [], []>} : vector<8x128xf32>, vector<128x128xf32>, vector<8x128xf32> -> vector<8x128xf32>
    %60 = vector.extract_strided_slice %6 {offsets = [4, 0], sizes = [1, 128], strides = [1, 1]} : vector<8x128xf32> to vector<1x128xf32>
    %61 = vector.broadcast %60 : vector<1x128xf32> to vector<8x128xf32>
    %62 = arith.addf %59, %61 : vector<8x128xf32>
    %c496 = arith.constant 496 : index
    %c0_24 = arith.constant 0 : index
    %63 = vector.load %arg3[%c496, %c0_24] : memref<624x128xf32, #tpu.memory_space<vmem>>, vector<128x128xf32>
    %cst_25 = arith.constant dense<0.000000e+00> : vector<8x128xf32>
    %64 = tpu.matmul %62, %63, %cst_25 {dimension_numbers = #tpu.dot_dimension_numbers<[1], [0], [0], [1], [0, 0, 1, 1], [], []>} : vector<8x128xf32>, vector<128x128xf32>, vector<8x128xf32> -> vector<8x128xf32>
    %65 = vector.extract_strided_slice %6 {offsets = [5, 0], sizes = [1, 128], strides = [1, 1]} : vector<8x128xf32> to vector<1x128xf32>
    %66 = vector.broadcast %65 : vector<1x128xf32> to vector<8x128xf32>
    %67 = arith.addf %64, %66 : vector<8x128xf32>
    %c0_26 = arith.constant 0 : index
    %c0_27 = arith.constant 0 : index
    %68 = vector.load %arg6[%c0_26, %c0_27] : memref<8x32xf32, #tpu.memory_space<vmem>>, vector<8x32xf32>
    tpu.vector_store %arg6[%c0_26, %c0_27], %38 {strides = array<i32>} : memref<8x32xf32, #tpu.memory_space<vmem>>, vector<8x32xf32>,
    %69 = vector.extract_strided_slice %67 {offsets = [0, 32], sizes = [8, 96], strides = [1, 1]} : vector<8x128xf32> to vector<8x96xf32>
    %70 = tpu.concatenate %38, %69 in 1 : vector<8x32xf32>, vector<8x96xf32> -> vector<8x128xf32>
    %c0_28 = arith.constant 0 : index
    %c0_29 = arith.constant 0 : index
    %c0_30 = arith.constant 0 : index
    %71 = vector.load %arg5[%c0_28, %c0_29, %c0_30] : memref<1x8x128xf32, #tpu.memory_space<vmem>>, vector<1x8x128xf32>
    %72 = vector.shape_cast %71 : vector<1x8x128xf32> to vector<8x128xf32>
    %73 = vector.shape_cast %70 : vector<8x128xf32> to vector<1x8x128xf32>
    tpu.vector_store %arg5[%c0_28, %c0_29, %c0_30], %73 {strides = array<i32>} : memref<1x8x128xf32, #tpu.memory_space<vmem>>, vector<1x8x128xf32>,
    return
  }
  func.func @transform_0(%arg0: i32) -> (i32, i32, i32) {
    %c0_i32 = arith.constant 0 : i32
    %c0_i32_0 = arith.constant 0 : i32
    %c0_i32_1 = arith.constant 0 : i32
    return %arg0, %c0_i32, %c0_i32_0 : i32, i32, i32
  }
  func.func @transform_1(%arg0: i32) -> (i32, i32) {
    %c0_i32 = arith.constant 0 : i32
    %c0_i32_0 = arith.constant 0 : i32
    %c0_i32_1 = arith.constant 0 : i32
    return %c0_i32, %c0_i32_0 : i32, i32
  }
  func.func @transform_2(%arg0: i32) -> (i32, i32) {
    %c0_i32 = arith.constant 0 : i32
    %c0_i32_0 = arith.constant 0 : i32
    %c0_i32_1 = arith.constant 0 : i32
    return %c0_i32, %c0_i32_0 : i32, i32
  }
  func.func @transform_3(%arg0: i32) -> (i32, i32) {
    %c0_i32 = arith.constant 0 : i32
    %c0_i32_0 = arith.constant 0 : i32
    %c0_i32_1 = arith.constant 0 : i32
    return %c0_i32, %c0_i32_0 : i32, i32
  }
  func.func @transform_4(%arg0: i32) -> (i32, i32, i32) {
    %c0_i32 = arith.constant 0 : i32
    %c0_i32_0 = arith.constant 0 : i32
    %c0_i32_1 = arith.constant 0 : i32
    return %arg0, %c0_i32, %c0_i32_0 : i32, i32, i32
  }
}

</mosaic_0001>

<bundles_post_ra>
// kernel: tpu_custom_call.1
= control target key start
LH: loop header
LB: loop body
LE: loop exit
PB: predicated region body
PF: predicated region fallthrough
CT: control target
= control target key end

     0   :  { %9 = vsyncpa [#allocation4], 0  ;;  %s2080_s0 = inlined_call_operand.hbm [shape: f32[8,8,20], index: 0, kind: input, shape index: {}]   ;;  %s2081_s1 = inlined_call_operand.hbm [shape: f32[8,32], index: 1, kind: input, shape index: {}]   ;;  %s2082_s2 = inlined_call_operand.hbm [shape: f32[624,128], index: 2, kind: input, shape index: {}]   ;;  %s2083_s3 = inlined_call_operand.vmem [shape: f32[8,128], index: 3, kind: input, shape index: {}]   ;;  %s2084_s4 = inlined_call_operand.hbm [shape: f32[8,8,128], index: 4, kind: output, shape index: {}]  }
   0x1   :  { %11 = vsyncpa [#allocation4 + $0x1], 0 }
   0x2   :  { %12 = vsyncpa [#allocation7], 0 }
   0x3   :  { %13 = vsyncpa [#allocation5], 0 }
   0x4   :  { %15 = vsyncpa [#allocation5 + $0x1], 0  ;;  %s1758_s15 = smov 0   ;;  %s1760_s16 = smov 0  }
   0x5   :  { %s1762_s17 = smov 0   ;;  %s1764_s18 = smov 0  }
   0x6 LB: > { %s1779_s19 = sadd.s32 4294967295, %s1719_s18   ;;  %s1072_s20 = sadd.s32 4294967294, %s1719_s18   ;;  %s1719_s18 = sphi %s1764_s18, %s2104_s18   ;;  %s1715_s17 = sphi %s1762_s17, %s2103_s17   ;;  %s1711_s16 = sphi %s1760_s16, %s2102_s16   ;;  %s1707_s15 = sphi %s1758_s15, %s2101_s15  }
   0x7   : > { %p41_p0 = scmp.ne.s32.totalorder %s1711_s16, %s1707_s15  ;;  %p2085_p1 = scmp.eq.s32.totalorder %s1779_s19, 0 }
   0x8   : > { %p134_p3 = scmp.eq.s32.totalorder %s1072_s20, 7  ;;  %p1073_p5 = scmp.ge.s32.totalorder %s1719_s18, 1 }
   0x9   : > { %p1788_p4 = por %p2085_p1, %p41_p0  ;;  %p141_p7 = scmp.lt.s32.totalorder %s1719_s18, 9 }
   0xa   : > { %p1793_p6 = por %p134_p3, %p41_p0  ;;  %s1721_s24 = smov [#allocation6]  }
   0xb   : > { %s2088_s21 = scalar_select %p1788_p4, 1, 0 }
   0xc   : > { %s2089_s22 = scalar_select %p1793_p6, 1, 0 }
   0xd   : > { %p1799_p9 = pnand %p1073_p5, %p141_p7  ;;  %s154_s25 = sshll.u32 %s1721_s24, 4  ;;  %s155_s25 = int_to_ptr.vmem [resolvable:$true] %s154_s25 }
   0xe   : > { %s1722_s26 = smov [#allocation8]   ;;  %s1563_s5 = scalar_lea.hbm %s2081_s1, 128 }
   0xf   : > { %s2090_s23 = scalar_select %p1799_p9, 1, 0 }
  0x10   : > { %p1488_p10 = pneg %p1799_p9  ;;  %s164_s27 = sshll.u32 %s1722_s26, 4  ;;  %s1811_s27 = int_to_ptr.vmem [resolvable:$true] %s164_s27 }
  0x11   : > { %p1564_p12 = scmp.ne.s32.totalorder %s2081_s1, %s1563_s5  ;;  %p1570_p5 = scmp.lt.u32.totalorder %s1563_s5, %s2081_s1 }
  0x12   : > { %p1807_p11 = pnand %p1488_p10, %p2085_p1 }
  0x14   : > { %p1565_p13 = pneg %p1807_p11 }
  0x16   : > { %p1566_p0 = pnand %p1565_p13, %p1564_p12 }
  0x18   : > { %p1567_p3 = pneg %p1566_p0 }
  0x1a   : > { %p1572_p7 = pnand %p1570_p5, %p1567_p3 }
  0x1c   : > { %1575 = shalt.err (!%p1572_p7)
}
  0x1d   : > { %s1576_s10 = scalar_lea.vmem %s155_s25, 128  ;;  %p1584_p2 = scmp.lt.s32.totalorder %s155_s25, %s155_s25 }
  0x1e   : > { %p1577_p10 = scmp.ne.s32.totalorder %s155_s25, %s1576_s10  ;;  %p1585_p6 = scmp.lt.s32.totalorder %s1576_s10, %s1576_s10 }
  0x20   : > { %p1579_p8 = pnand %p1577_p10, %p1565_p13  ;;  %p1586_p4 = por %p1585_p6, %p1584_p2 }
  0x22   : > { %p1580_p1 = pneg %p1579_p8 }
  0x24   : > { %p1587_p9 = pnand %p1586_p4, %p1580_p1 }
  0x26   : > { %1590 = shalt.err (!%p1587_p9)
}
  0x27   : > { %1491 = dma.hbm_to_vmem [thread:$0]  (!%p1807_p11), %s2081_s1, 128, %s155_s25, [#allocation7]  }
  0x28   : > { %s1591_s20 = scalar_lea.hbm %s2082_s2, 9984 }
  0x29   : > { %p1592_p8 = scmp.ne.s32.totalorder %s2082_s2, %s1591_s20  ;;  %p1598_p4 = scmp.lt.u32.totalorder %s1591_s20, %s2082_s2 }
  0x2b   : > { %p1594_p2 = pnand %p1592_p8, %p1565_p13 }
  0x2d   : > { %p1595_p1 = pneg %p1594_p2 }
  0x2f   : > { %p1600_p6 = pnand %p1598_p4, %p1595_p1 }
  0x31   : > { %1603 = shalt.err (!%p1600_p6)
}
  0x32   : > { %s1604_s25 = scalar_lea.vmem %s1811_s27, 9984  ;;  %p1612_p3 = scmp.lt.s32.totalorder %s1811_s27, %s1811_s27 }
  0x33   : > { %p1605_p9 = scmp.ne.s32.totalorder %s1811_s27, %s1604_s25  ;;  %p1613_p5 = scmp.lt.s32.totalorder %s1604_s25, %s1604_s25 }
  0x35   : > { %p1607_p12 = pnand %p1605_p9, %p1565_p13  ;;  %p1614_p7 = por %p1613_p5, %p1612_p3 }
  0x37   : > { %p1608_p0 = pneg %p1607_p12 }
  0x39   : > { %p1615_p10 = pnand %p1614_p7, %p1608_p0 }
  0x3b   : > { %1618 = shalt.err (!%p1615_p10)
}
  0x3c   : > { %s1723_s5 = smov 128   ;;  %s1724_s6 = smov 8  }
  0x3d   : > { %1494 = dma.hbm_to_vmem [thread:$0]  (!%p1807_p11), %s2082_s2, 9984, %s1811_s27, [#allocation7], %s1723_s5, %s1723_s5, %s1724_s6  }
  0x3e   : > { %s1861_s9 = sadd.s32 1, %s1719_s18   ;;  %s28_s10 = sadd.s32 1, %s1715_s17 }
  0x3f   : > { %s25_s11 = ssub.s32 %s1719_s18, %s1861_s9  ;;  %p35_p13 = scmp.ne.s32.totalorder %s1715_s17, %s1711_s16 }
  0x40   : > { %p26_p8 = scmp.eq.s32.totalorder %s25_s11, 0  ;;  %p36_p2 = scmp.eq.s32.totalorder %s1719_s18, 0 }
  0x41   : > { %p2092_p1 = scmp.eq.s32.totalorder %s1779_s19, 7  ;;  %p1505_p6 = scmp.lt.s32.totalorder %s1719_s18, 8 }
  0x42   : > { %s1877_s13 = scalar_select %p26_p8, %s1715_s17, %s28_s10  }
  0x43   : > { %p1871_p4 = por %p2092_p1, %p35_p13  ;;  %p37_p9 = por %p36_p2, %p35_p13 }
  0x44   : > { %s181_s28 = sand.u32 1, %s1715_s17   ;;  %s1078_s27 = sshll.u32 %s1719_s18, 7 }
  0x45   : > { %s1077_s14 = sshll.u32 %s181_s28, 3  ;;  %s1884_s26 = scalar_lea.hbm %s2080_s0, %s1078_s27 }
  0x46   : > { %s185_s29 = scalar_lea.vmem [#allocation3], %s1077_s14  ;;  %p1888_p11 = pnand %p1505_p6, %p37_p9 }
  0x47   : > { %s192_s30 = sshll.u32 %s185_s29, 4  ;;  %s182_s5 = scalar_lea.sflag [#allocation4], %s181_s28  ;;  %s1886_s30 = int_to_ptr.vmem [resolvable:$true] %s192_s30 }
  0x48   : > { %s1619_s6 = scalar_lea.hbm %s1884_s26, 128  ;;  %p1621_p0 = pneg %p1888_p11 }
  0x49   : > { %p1620_p12 = scmp.ne.s32.totalorder %s1884_s26, %s1619_s6  ;;  %s1624_s10 = scalar_lea.hbm %s2080_s0, 1024 }
  0x4a   : > { %p1625_p7 = scmp.lt.u32.totalorder %s1884_s26, %s2080_s0  ;;  %p1626_p10 = scmp.lt.u32.totalorder %s1624_s10, %s1619_s6 }
  0x4b   : > { %p1622_p3 = pnand %p1621_p0, %p1620_p12  ;;  %p1628_p8 = scmp.lt.u32.totalorder %s1619_s6, %s1884_s26 }
  0x4c   : > { %p1627_p13 = por %p1626_p10, %p1625_p7 }
  0x4d   : > { %p1623_p5 = pneg %p1622_p3 }
  0x4e   : > { %p1629_p2 = por %p1628_p8, %p1627_p13 }
  0x50   : > { %p1630_p1 = pnand %p1629_p2, %p1623_p5 }
  0x52   : > { %1633 = shalt.err (!%p1630_p1)
}
  0x53   : > { %s1634_s28 = scalar_lea.vmem %s1886_s30, 128  ;;  %s1725_s27 = smov [#allocation3]  }
  0x54   : > { %p1635_p6 = scmp.ne.s32.totalorder %s1886_s30, %s1634_s28  ;;  %s1639_s20 = sshll.u32 %s1725_s27, 4  ;;  %s1640_s20 = int_to_ptr.vmem [resolvable:$false] %s1639_s20 }
  0x55   : > { %s1641_s24 = scalar_lea.vmem %s1640_s20, 256  ;;  %p1642_p3 = scmp.lt.s32.totalorder %s1886_s30, %s1640_s20 }
  0x56   : > { %p1637_p9 = pnand %p1635_p6, %p1621_p0  ;;  %p1643_p7 = scmp.lt.s32.totalorder %s1641_s24, %s1634_s28 }
  0x58   : > { %p1638_p12 = pneg %p1637_p9  ;;  %p1644_p10 = por %p1643_p7, %p1642_p3 }
  0x5a   : > { %p1645_p13 = pnand %p1644_p10, %p1638_p12 }
  0x5c   : > { %1648 = shalt.err (!%p1645_p13)
}
  0x5d   : > { %1498 = dma.hbm_to_vmem [thread:$0]  (!%p1888_p11), %s1884_s26, 128, %s1886_s30, %s182_s5  }
  0x5e   : > { %p2095_p5 = scmp.ne.s32.totalorder %s2090_s23, 0 }
  0x5f   : > { %s1920_s29 = sand.u32 (!%p2095_p5), 1, %s1711_s16   ;;  %p2096_p0 = scmp.ne.s32.totalorder (!%p2095_p5), %s2088_s21, 0 }
  0x60   : > { %201 = sbr.rel (%p2095_p5) target bundleno = 1945 (0x799), region = 36  ;;  %s1080_s6 = sshll.u32 (!%p2095_p5), %s1920_s29, 3 }
  0x61   : > { %s204_s7 = scalar_lea.sflag (!%p2095_p5), [#allocation4], %s1920_s29  ;;  %s1924_s8 = scalar_lea.vmem (!%p2095_p5), [#allocation3], %s1080_s6 }
  0x67   : > { %1694 = dma.done.wait (%p2096_p0), %s204_s7, 128  }
  0x68   : > { %1696 = vsyncadd (%p2096_p0), %s204_s7, 4294967168  ;;  %p2097_p11 = scmp.eq.s32.totalorder %s1779_s19, 0 }
  0x6a   : > { %1698 = dma.done.wait (%p2097_p11), [#allocation7], 10112   ;;  %p2098_p8 = pmov %p2097_p11 }
  0x6b   : > { %s1934_s23 = scalar_lea.vmem [#allocation9], %s1080_s6  ;;  %p2099_p2 = scmp.ne.s32.totalorder %s1779_s19, 0 }
  0x6c   : > { %1700 = vsyncadd (%p2098_p8), [#allocation7], 4294957184  ;;  %v244_v0 = vld [vmem:[#allocation6] sm:$0xff] (!%p2099_p2)  ;;  %vm245_vm0 = vcmask (!%p2099_p2), 261120  }
  0x6d   : > { %243 = sbr.rel (%p2099_p2) target bundleno = 116 (0x74), region = 52  ;;  %246 = vst.msk [vmem:[#allocation2] sm:$0xff] (!%p2099_p2), %vm245_vm0, %v244_v0 }
  0x74 PF: > { %v253_v1 = vld [vmem:[#allocation8 + $0x18] sm:$0xff]  ;;  %v254_v2 = vld [vmem:[#allocation8 + $0x20] sm:$0xff]  ;;  %v1726_v4 = vmov 0.0|0.0   ;;  %v251_v6 = vld [vmem:[#allocation8 + $0x8] sm:$0xff]  ;;  %vm1727_vm1 = vmmov 0   ;;  %v1728_v10 = vmov 0.0   ;;  %v412_v15 = vlaneseq }
  0x75   : > { %v250_v3 = vld [vmem:[#allocation8] sm:$0xff]  ;;  %1362 = vmatprep.subr.bf16.mxu0 %v1726_v4  ;;  %v1363_v5 = vpack.c.bf16 %v254_v2, %v253_v1  ;;  %1368 = vmatprep.subr.bf16.mxu1 %v1726_v4  ;;  %v255_v7 = vld [vmem:[#allocation8 + $0x28] sm:$0xff]  ;;  %v256_v8 = vld [vmem:[#allocation8 + $0x30] sm:$0xff]  ;;  %vm338_vm2 = vcmask 1043456   ;;  %vm334_vm3 = vcmask 162816   ;;  %vm257_vm4 = vcmask 261120  }
  0x76   : > { %v1369_v9 = vpack.c.bf16 %v251_v6, %v250_v3  ;;  %1199 = vmatprep.mubr.msk.f32.mxu1 %vm1727_vm1, %v1728_v10  ;;  %1190 = vmatprep.mubr.msk.f32.mxu0 %vm1727_vm1, %v1728_v10  ;;  %v1366_v11 = vpack.c.bf16 %v256_v8, %v255_v7  ;;  %v252_v12 = vld [vmem:[#allocation8 + $0x10] sm:$0xf]  ;;  %v248_v14 = vld [vmem:[#allocation2] sm:$0xff]  ;;  %v1956_v16 = vshrl.u32 %v412_v15, 7  ;;  %s1729_s30 = smov 32   ;;  %s1730_s25 = smov 64  }
  0x77   : > { %1364 = vmatpush3.bf16.msra.mxu0 %v1363_v5  ;;  %v247_v13 = vld [vmem:[%s1924_s8] sm:$0xff]  ;;  %v1962_v18 = vld [vmem:[%s2083_s3] sm:$0xff]  ;;  %v446_v35 = vld [vmem:[#allocation8 + $0x58] sm:$0xff]  ;;  %s1731_s5 = smov 96   ;;  %s1093_s10 = sshll.u32 %s1779_s19, 7 }
  0x78   : > { %1370 = vmatpush3.bf16.msra.mxu1 %v1369_v9  ;;  %1365 = vmatprep.subr.bf16.mxu0 %v1726_v4  ;;  %v414_v17 = vsub.s32 0, %v1956_v16  ;;  %v445_v34 = vld [vmem:[#allocation8 + $0x50] sm:$0xff]  ;;  %v331_v36 = vld [vmem:[#allocation8 + $0x38] sm:$0xff]  ;;  %v332_v38 = vld [vmem:[#allocation8 + $0x40] sm:$0xff]  ;;  %s983_s11 = sshll.u32 %s1934_s23, 4  ;;  %s2034_s27 = scalar_lea.hbm %s2084_s4, %s1093_s10  ;;  %s2036_s11 = int_to_ptr.vmem [resolvable:$true] %s983_s11 }
  0x79   : > { %1197 = vmatprep.subr.mxu1 %v1728_v10  ;;  %v1372_v37 = vpack.c.bf16 %v446_v35, %v445_v34  ;;  %v447_v39 = vld [vmem:[#allocation8 + $0x60] sm:$0xff]  ;;  %v448_v40 = vld [vmem:[#allocation8 + $0x68] sm:$0xff]  ;;  %v1378_v41 = vpack.c.bf16 %v332_v38, %v331_v36  ;;  %v603_v45 = vld [vmem:[#allocation8 + $0x70] sm:$0xff]  ;;  %s970_s20 = scalar_lea.sflag [#allocation5], %s1920_s29  ;;  %s1649_s19 = scalar_lea.vmem %s2036_s11, 128 }
  0x7a   : > { %v415_v20 = vrot.slane %v1962_v18, %v414_v17  ;;  %v1375_v42 = vpack.c.bf16 %v448_v40, %v447_v39  ;;  %v333_v44 = vld [vmem:[#allocation8 + $0x48] sm:$0xf]  ;;  %v604_v46 = vld [vmem:[#allocation8 + $0x78] sm:$0xff]  ;;  %v605_v47 = vld [vmem:[#allocation8 + $0x80] sm:$0xff]  ;;  %p1650_p1 = scmp.ne.s32.totalorder %s2036_s11, %s1649_s19  ;;  %s1732_s24 = smov [#allocation9]  }
  0x7b   : > { %1367 = vmatpush3.bf16.msra.mxu0 %v1366_v11  ;;  %v1381_v48 = vpack.c.bf16 %v604_v46, %v603_v45  ;;  %v606_v49 = vld [vmem:[#allocation8 + $0x88] sm:$0xff]  ;;  %v607_v52 = vld [vmem:[#allocation8 + $0x90] sm:$0xff]  ;;  %v608_v53 = vld [vmem:[#allocation8 + $0x98] sm:$0xff]  ;;  %s1653_s6 = sshll.u32 %s1732_s24, 4  ;;  %s1654_s6 = int_to_ptr.vmem [resolvable:$false] %s1653_s6 }
  0x7c   : > { %1198 = vmatpush3.msk.msra.mxu1 %vm338_vm2, %v252_v12  ;;  %1377 = vmatprep.subr.bf16.mxu0 %v1726_v4  ;;  %v1384_v50 = vpack.c.bf16 %v606_v49, %v605_v47  ;;  %v1387_v55 = vpack.c.bf16 %v608_v53, %v607_v52  ;;  %v609_v57 = vld [vmem:[#allocation8 + $0xa0] sm:$0xff]  ;;  %v610_v58 = vld [vmem:[#allocation8 + $0xa8] sm:$0xff]  ;;  %v611_v2 = vld [vmem:[#allocation8 + $0xb0] sm:$0xff]  ;;  %p1651_p6 = pnand %p1650_p1, %p1871_p4  ;;  %s1655_s7 = scalar_lea.vmem %s1654_s6, 256 }
  0x7d   : > { %1200 = vmatmul.mubr.msk.f32.vlgmr.msra.gmra.mrb[0].mxu1 %vm334_vm3, %v247_v13  ;;  %1371 = vmatprep.subr.bf16.mxu1 %v1726_v4  ;;  %v1390_v62 = vpack.c.bf16 %v610_v58, %v609_v57  ;;  %v612_v3 = vld [vmem:[#allocation8 + $0xb8] sm:$0xff]  ;;  %v613_v6 = vld [vmem:[#allocation8 + $0xc0] sm:$0xff]  ;;  %v614_v7 = vld [vmem:[#allocation8 + $0xc8] sm:$0xff]  ;;  %p1656_p12 = scmp.lt.s32.totalorder %s2036_s11, %s1654_s6  ;;  %p1657_p3 = scmp.lt.s32.totalorder %s1655_s7, %s1649_s19 }
  0x7e   : > { %1191 = vmatmul.mubr.msk.f32.vlgmr.msra.gmra.mrb[0].mxu0 %vm257_vm4, %v248_v14  ;;  %1210 = vmatprep.mubr.msk.f32.mxu1 %vm1727_vm1, %v1728_v10  ;;  %v1393_v5 = vpack.c.bf16 %v612_v3, %v611_v2  ;;  %v1396_v8 = vpack.c.bf16 %v614_v7, %v613_v6  ;;  %v615_v9 = vld [vmem:[#allocation8 + $0xd0] sm:$0xff]  ;;  %v616_v11 = vld [vmem:[#allocation8 + $0xd8] sm:$0xff]  ;;  %v704_v40 = vld [vmem:[#allocation8 + $0x140] sm:$0xff]  ;;  %p1652_p9 = pneg %p1651_p6 }
  0x7f   : > { %1219 = vmatprep.mubr.msk.f32.mxu0 %vm1727_vm1, %v1728_v10  ;;  %1373 = vmatpush3.bf16.msra.mxu1 %v1372_v37  ;;  %v1399_v12 = vpack.c.bf16 %v616_v11, %v615_v9  ;;  %v694_v17 = vld [vmem:[#allocation8 + $0xf0] sm:$0xff]  ;;  %v708_v46 = vld [vmem:[#allocation8 + $0x160] sm:$0xff]  ;;  %v709_v47 = vld [vmem:[#allocation8 + $0x168] sm:$0xff]  ;;  %p1658_p7 = por %p1657_p3, %p1656_p12 }
  0x80   : > { %1379 = vmatpush3.bf16.msra.mxu0 %v1378_v41  ;;  %1374 = vmatprep.subr.bf16.mxu1 %v1726_v4  ;;  %v705_v41 = vld [vmem:[#allocation8 + $0x148] sm:$0xff]  ;;  %v785_v49 = vld [vmem:[#allocation8 + $0x170] sm:$0xff]  ;;  %v791_v58 = vld [vmem:[#allocation8 + $0x1a0] sm:$0xff] }
  0x81   : > { %1217 = vmatprep.subr.mxu0 %v1728_v10  ;;  %v788_v53 = vld [vmem:[#allocation8 + $0x188] sm:$0xff]  ;;  %p1659_p10 = pnand %p1658_p7, %p1652_p9 }
  0x82   : > { %v796_v9 = vld [vmem:[#allocation8 + $0x1c8] sm:$0xff] }
  0x83   : > { %1376 = vmatpush3.bf16.msra.mxu1 %v1375_v42  ;;  %v1420_v42 = vpack.c.bf16 %v705_v41, %v704_v40  ;;  %v712_v40 = vsub.s32 3, %v1956_v16 }
  0x84   : > { %1218 = vmatpush3.msk.msra.mxu0 %vm338_vm2, %v333_v44  ;;  %1404 = vmatprep.subr.bf16.mxu1 %v1726_v4  ;;  %v707_v44 = vld [vmem:[#allocation8 + $0x158] sm:$0xff] }
  0x85   : > { %1220 = vmatmul.mubr.msk.f32.vlgmr.msra.gmra.mrb[2].mxu0 %vm334_vm3, %v247_v13  ;;  %1380 = vmatprep.subr.bf16.mxu0 %v1726_v4  ;;  %v617_v13 = vld [vmem:[#allocation8 + $0xe0] sm:$0xff]  ;;  %v713_v41 = vrot.slane %v1962_v18, %v712_v40 }
  0x86   : > { %1254 = vmatprep.mubr.msk.f32.mxu0 %vm1727_vm1, %v1728_v10  ;;  %1382 = vmatpush3.bf16.msra.mxu0 %v1381_v48  ;;  %v1426_v48 = vpack.c.bf16 %v709_v47, %v708_v46  ;;  %v889_v46 = vld [vmem:[#allocation8 + $0x260] sm:$0xff]  ;;  %v890_v47 = vld [vmem:[#allocation8 + $0x268] sm:$0xff] }
  0x87   : > { %1383 = vmatprep.subr.bf16.mxu0 %v1726_v4 }
  0x8a   : > { %1385 = vmatpush3.bf16.msra.mxu0 %v1384_v50  ;;  %v786_v50 = vld [vmem:[#allocation8 + $0x178] sm:$0xff] }
  0x8b   : > { %1386 = vmatprep.subr.bf16.mxu0 %v1726_v4  ;;  %v1429_v52 = vpack.c.bf16 %v786_v50, %v785_v49  ;;  %v803_v49 = vsub.s32 4, %v1956_v16 }
  0x8e   : > { %1388 = vmatpush3.bf16.msra.mxu0 %v1387_v55  ;;  %v789_v55 = vld [vmem:[#allocation8 + $0x190] sm:$0xff] }
  0x8f   : > { %1389 = vmatprep.subr.bf16.mxu0 %v1726_v4 }
  0x92   : > { %1391 = vmatpush3.bf16.msra.mxu0 %v1390_v62  ;;  %v794_v62 = vld [vmem:[#allocation8 + $0x1b8] sm:$0xff] }
  0x93   : > { %1392 = vmatprep.subr.bf16.mxu0 %v1726_v4 }
  0x96   : > { %1394 = vmatpush3.bf16.msra.mxu0 %v1393_v5 }
  0x97   : > { %1395 = vmatprep.subr.bf16.mxu0 %v1726_v4 }
  0x9a   : > { %1397 = vmatpush3.bf16.msra.mxu0 %v1396_v8  ;;  %v795_v8 = vld [vmem:[#allocation8 + $0x1c0] sm:$0xff] }
  0x9b   : > { %1398 = vmatprep.subr.bf16.mxu0 %v1726_v4  ;;  %v1444_v11 = vpack.c.bf16 %v796_v9, %v795_v8 }
  0x9e   : > { %1400 = vmatpush3.bf16.msra.mxu0 %v1399_v12  ;;  %v797_v12 = vld [vmem:[#allocation8 + $0x1d0] sm:$0xff] }
  0x9f   : > { %1401 = vmatprep.subr.bf16.mxu0 %v1726_v4 }
 0x150   : > { %v408_v19 = vpop.f32.mrb[0].mxu1 }
 0x151   : > { %v327_v21 = vpop.f32.mrb[0].mxu0  ;;  %v1201_v22 = vpop.f32.mrb[1].mxu1 }
 0x152   : > { %v409_v23 = vadd.f32 %v408_v19, %v327_v21  ;;  %v1192_v24 = vpop.f32.mrb[1].mxu0  ;;  %v695_v19 = vld [vmem:[#allocation8 + $0xf8] sm:$0xff]  ;;  %v697_v22 = vld [vmem:[#allocation8 + $0x108] sm:$0xff] }
 0x153   : > { %v1405_v21 = vpack.c.bf16 %v695_v19, %v694_v17  ;;  %v698_v24 = vld [vmem:[#allocation8 + $0x110] sm:$0xff]  ;;  %v800_v17 = vld [vmem:[#allocation8 + $0x1e8] sm:$0xff] }
 0x154   : > { %v416_v25 = vadd.f32 %v415_v20, %v409_v23  ;;  %v696_v20 = vld [vmem:[#allocation8 + $0x100] sm:$0xff] }
 0x155   : > { %v1408_v23 = vpack.c.bf16 %v697_v22, %v696_v20  ;;  %v875_v20 = vld [vmem:[#allocation8 + $0x1f0] sm:$0xff]  ;;  %v877_v22 = vld [vmem:[#allocation8 + $0x200] sm:$0xff] }
 0x156   : > { %424 = vrot.lane.b32.xlu0 %v416_v25, %s1729_s30  ;;  %v1088_v26 = vmul.f32 -1.442695, %v416_v25 }
 0x158   : > { %1551 = vpow2.f32 %v1088_v26  ;;  %v593_v63 = vpop.f32.mrb[2].mxu0 }
 0x159   : > { %v1221_v0 = vpop.f32.mrb[3].mxu0 }
 0x15a   : > { %v621_v0 = vsub.s32 2, %v1956_v16 }
 0x15c   : > { %v622_v2 = vrot.slane %v1962_v18, %v621_v0 }
 0x162   : > { %v1552_v27 = vpop.eup %1551 }
 0x163   : > { %v420_v28 = vadd.f32 1.0, %v1552_v27  ;;  %v700_v27 = vld [vmem:[#allocation8 + $0x120] sm:$0xff] }
 0x165   : > { %1553 = vrcp.f32 %v420_v28  ;;  %v701_v28 = vld [vmem:[#allocation8 + $0x128] sm:$0xff] }
 0x16f   : > { %v1554_v29 = vpop.eup %1553 }
 0x170   : > { %v434_v54 = vsub.f32 1.0, %v1554_v29 }
 0x1c8   : > { %v425_v30 = vpop.permute.xlu0 %424 }
 0x1c9   : > { %v427_v31 = vmul.f32 %v1554_v29, %v425_v30  ;;  %v702_v30 = vld [vmem:[#allocation8 + $0x130] sm:$0xff] }
 0x1cb   : > { %429 = vrot.lane.b32.xlu0 %v427_v31, %s1730_s25  ;;  %v703_v31 = vld [vmem:[#allocation8 + $0x138] sm:$0xff] }
 0x23d   : > { %v430_v32 = vpop.permute.xlu0 %429 }
 0x23e   : > { %v432_v33 = vadd.f32 %v430_v32, %v416_v25  ;;  %v699_v25 = vld [vmem:[#allocation8 + $0x118] sm:$0xff]  ;;  %v1417_v32 = vpack.c.bf16 %v703_v31, %v702_v30  ;;  %v883_v31 = vld [vmem:[#allocation8 + $0x230] sm:$0xff] }
 0x23f   : > { %v1411_v26 = vpack.c.bf16 %v699_v25, %v698_v24  ;;  %v879_v25 = vld [vmem:[#allocation8 + $0x210] sm:$0xff] }
 0x240   : > { %1555 = vtanh.f32 %v432_v33  ;;  %v599_v33 = vsub.s32 1, %v1956_v16 }
 0x242   : > { %v600_v34 = vrot.slane %v1962_v18, %v599_v33 }
 0x24a   : > { %v1556_v43 = vpop.eup %1555 }
 0x24b   : > { %436 = vrot.lane.b32.xlu1 %v1556_v43, %s1731_s5  ;;  %v706_v43 = vld [vmem:[#allocation8 + $0x150] sm:$0xff] }
 0x24c   : > { %v1423_v45 = vpack.c.bf16 %v707_v44, %v706_v43 }
 0x24f   : > { %440 = vrot.lane.b32.xlu1 %v248_v14, %s1729_s30  ;;  %v618_v14 = vld [vmem:[#allocation8 + $0xe8] sm:$0xff] }
 0x250   : > { %v1402_v15 = vpack.c.bf16 %v618_v14, %v617_v13  ;;  %v798_v13 = vld [vmem:[#allocation8 + $0x1d8] sm:$0xff] }
 0x251   : > { %v1447_v14 = vpack.c.bf16 %v798_v13, %v797_v12 }
 0x252   : > { %1403 = vmatpush3.bf16.msra.mxu0 %v1402_v15  ;;  %v799_v15 = vld [vmem:[#allocation8 + $0x1e0] sm:$0xff] }
 0x253   : > { %1428 = vmatprep.subr.bf16.mxu0 %v1726_v4  ;;  %v1450_v19 = vpack.c.bf16 %v800_v17, %v799_v15 }
 0x2bd   : > { %v437_v51 = vpop.permute.xlu1 %436 }
 0x2be   : > { %v439_v59 = vmul.f32 %v437_v51, %v434_v54  ;;  %v787_v51 = vld [vmem:[#allocation8 + $0x180] sm:$0xff] }
 0x2bf   : > { %v1432_v54 = vpack.c.bf16 %v788_v53, %v787_v51  ;;  %v893_v53 = vsub.s32 5, %v1956_v16 }
 0x2c1   : > { %v441_v56 = vpop.permute.xlu1 %440 }
 0x2c2   : > { %v443_v60 = vmul.f32 %v1554_v29, %v441_v56  ;;  %v1414_v29 = vpack.c.bf16 %v701_v28, %v700_v27  ;;  %v790_v56 = vld [vmem:[#allocation8 + $0x198] sm:$0xff]  ;;  %v881_v28 = vld [vmem:[#allocation8 + $0x220] sm:$0xff] }
 0x2c3   : > { %v1435_v57 = vpack.c.bf16 %v790_v56, %v789_v55 }
 0x2c4   : > { %v444_v61 = vadd.f32 %v443_v60, %v439_v59  ;;  %v792_v59 = vld [vmem:[#allocation8 + $0x1a8] sm:$0xff] }
 0x2c5   : > { %v1438_v60 = vpack.c.bf16 %v792_v59, %v791_v58 }
 0x2c6   : > { %450 = vrot.lane.b32.xlu0 %v444_v61, %s1731_s5  ;;  %v793_v61 = vld [vmem:[#allocation8 + $0x1b0] sm:$0xff] }
 0x338   : > { %v1981_v1 = vpop.permute.xlu0 %450 }
 0x339   : > { %966 = vst.msk [vmem:[#allocation2] sm:$0xff] %vm257_vm4, %v1981_v1  ;;  %1211 = vmatmul.mubr.msk.f32.vlgmr.msra.gmra.mrb[2].mxu1 %vm257_vm4, %v1981_v1 }
 0x33a   : > { %1289 = vmatprep.mubr.msk.f32.mxu1 %vm1727_vm1, %v1728_v10  ;;  %1406 = vmatpush3.bf16.msra.mxu1 %v1405_v21  ;;  %v876_v21 = vld [vmem:[#allocation8 + $0x1f8] sm:$0xff] }
 0x33b   : > { %1407 = vmatprep.subr.bf16.mxu1 %v1726_v4 }
 0x33e   : > { %1409 = vmatpush3.bf16.msra.mxu1 %v1408_v23  ;;  %v878_v23 = vld [vmem:[#allocation8 + $0x208] sm:$0xff] }
 0x33f   : > { %1410 = vmatprep.subr.bf16.mxu1 %v1726_v4  ;;  %v1456_v24 = vpack.c.bf16 %v878_v23, %v877_v22 }
 0x342   : > { %1412 = vmatpush3.bf16.msra.mxu1 %v1411_v26  ;;  %v880_v26 = vld [vmem:[#allocation8 + $0x218] sm:$0xff] }
 0x343   : > { %1413 = vmatprep.subr.bf16.mxu1 %v1726_v4  ;;  %v1459_v27 = vpack.c.bf16 %v880_v26, %v879_v25 }
 0x346   : > { %1415 = vmatpush3.bf16.msra.mxu1 %v1414_v29  ;;  %v882_v29 = vld [vmem:[#allocation8 + $0x228] sm:$0xff] }
 0x347   : > { %1416 = vmatprep.subr.bf16.mxu1 %v1726_v4  ;;  %v1462_v30 = vpack.c.bf16 %v882_v29, %v881_v28 }
 0x34a   : > { %1418 = vmatpush3.bf16.msra.mxu1 %v1417_v32  ;;  %v884_v32 = vld [vmem:[#allocation8 + $0x238] sm:$0xff] }
 0x34b   : > { %1419 = vmatprep.subr.bf16.mxu1 %v1726_v4  ;;  %v1465_v33 = vpack.c.bf16 %v884_v32, %v883_v31 }
 0x34e   : > { %1421 = vmatpush3.bf16.msra.mxu1 %v1420_v42 }
 0x34f   : > { %1422 = vmatprep.subr.bf16.mxu1 %v1726_v4 }
 0x352   : > { %1424 = vmatpush3.bf16.msra.mxu1 %v1423_v45 }
 0x353   : > { %1425 = vmatprep.subr.bf16.mxu1 %v1726_v4 }
 0x356   : > { %1427 = vmatpush3.bf16.msra.mxu1 %v1426_v48  ;;  %v1474_v48 = vpack.c.bf16 %v890_v47, %v889_v46 }
 0x357   : > { %1452 = vmatprep.subr.bf16.mxu1 %v1726_v4 }
 0x40c   : > { %v520_v35 = vpop.f32.mrb[2].mxu1 }
 0x40d   : > { %v594_v36 = vadd.f32 %v593_v63, %v520_v35  ;;  %v1212_v37 = vpop.f32.mrb[3].mxu1  ;;  %v1441_v63 = vpack.c.bf16 %v794_v62, %v793_v61  ;;  %v886_v35 = vld [vmem:[#allocation8 + $0x248] sm:$0xff] }
 0x40e   : > { %v887_v37 = vld [vmem:[#allocation8 + $0x250] sm:$0xff] }
 0x40f   : > { %v601_v38 = vadd.f32 %v600_v34, %v594_v36  ;;  %v885_v34 = vld [vmem:[#allocation8 + $0x240] sm:$0xff] }
 0x410   : > { %v1468_v36 = vpack.c.bf16 %v886_v35, %v885_v34 }
 0x411   : > { %1557 = vtanh.f32 %v601_v38  ;;  %v888_v38 = vld [vmem:[#allocation8 + $0x258] sm:$0xff] }
 0x41b   : > { %v1558_v39 = vpop.eup %1557 }
 0x41c   : > { %1255 = vmatmul.mubr.f32.vlgmr.msra.gmra.mrb[4].mxu0 %v1558_v39  ;;  %v1471_v39 = vpack.c.bf16 %v888_v38, %v887_v37 }
 0x41d   : > { %1324 = vmatprep.mubr.msk.f32.mxu0 %vm1727_vm1, %v1728_v10  ;;  %1430 = vmatpush3.bf16.msra.mxu0 %v1429_v52 }
 0x41e   : > { %1431 = vmatprep.subr.bf16.mxu0 %v1726_v4 }
 0x421   : > { %1433 = vmatpush3.bf16.msra.mxu0 %v1432_v54  ;;  %v894_v54 = vrot.slane %v1962_v18, %v893_v53 }
 0x422   : > { %1434 = vmatprep.subr.bf16.mxu0 %v1726_v4 }
 0x425   : > { %1436 = vmatpush3.bf16.msra.mxu0 %v1435_v57 }
 0x426   : > { %1437 = vmatprep.subr.bf16.mxu0 %v1726_v4 }
 0x429   : > { %1439 = vmatpush3.bf16.msra.mxu0 %v1438_v60 }
 0x42a   : > { %1440 = vmatprep.subr.bf16.mxu0 %v1726_v4 }
 0x42d   : > { %1442 = vmatpush3.bf16.msra.mxu0 %v1441_v63 }
 0x42e   : > { %1443 = vmatprep.subr.bf16.mxu0 %v1726_v4 }
 0x431   : > { %1445 = vmatpush3.bf16.msra.mxu0 %v1444_v11 }
 0x432   : > { %1446 = vmatprep.subr.bf16.mxu0 %v1726_v4 }
 0x435   : > { %1448 = vmatpush3.bf16.msra.mxu0 %v1447_v14 }
 0x436   : > { %1449 = vmatprep.subr.bf16.mxu0 %v1726_v4 }
 0x439   : > { %1451 = vmatpush3.bf16.msra.mxu0 %v1450_v19 }
 0x4ef   : > { %v689_v3 = vpop.f32.mrb[4].mxu0 }
 0x4f0   : > { %v690_v5 = vadd.f32 %v689_v3, %v622_v2  ;;  %v1256_v6 = vpop.f32.mrb[5].mxu0 }
 0x4f2   : > { %1559 = vtanh.f32 %v690_v5 }
 0x4fc   : > { %v1560_v7 = vpop.eup %1559 }
 0x4fd   : > { %1290 = vmatmul.mubr.f32.vlgmr.msra.gmra.mrb[4].mxu1 %v1560_v7 }
 0x4fe   : > { %1359 = vmatprep.mubr.msk.f32.mxu1 %vm1727_vm1, %v1728_v10  ;;  %v1453_v10 = vpack.c.bf16 %v876_v21, %v875_v20 }
 0x500   : > { %1454 = vmatpush3.bf16.msra.mxu1 %v1453_v10 }
 0x501   : > { %1455 = vmatprep.subr.bf16.mxu1 %v1726_v4 }
 0x504   : > { %1457 = vmatpush3.bf16.msra.mxu1 %v1456_v24 }
 0x505   : > { %1458 = vmatprep.subr.bf16.mxu1 %v1726_v4 }
 0x508   : > { %1460 = vmatpush3.bf16.msra.mxu1 %v1459_v27 }
 0x509   : > { %1461 = vmatprep.subr.bf16.mxu1 %v1726_v4 }
 0x50c   : > { %1463 = vmatpush3.bf16.msra.mxu1 %v1462_v30 }
 0x50d   : > { %1464 = vmatprep.subr.bf16.mxu1 %v1726_v4 }
 0x510   : > { %1466 = vmatpush3.bf16.msra.mxu1 %v1465_v33 }
 0x511   : > { %1467 = vmatprep.subr.bf16.mxu1 %v1726_v4 }
 0x514   : > { %1469 = vmatpush3.bf16.msra.mxu1 %v1468_v36 }
 0x515   : > { %1470 = vmatprep.subr.bf16.mxu1 %v1726_v4 }
 0x518   : > { %1472 = vmatpush3.bf16.msra.mxu1 %v1471_v39 }
 0x519   : > { %1473 = vmatprep.subr.bf16.mxu1 %v1726_v4  ;;  %v804_v4 = vrot.slane %v1962_v18, %v803_v49 }
 0x51c   : > { %1475 = vmatpush3.bf16.msra.mxu1 %v1474_v48 }
 0x5d0   : > { %v780_v42 = vpop.f32.mrb[4].mxu1 }
 0x5d1   : > { %v781_v43 = vadd.f32 %v780_v42, %v713_v41  ;;  %v1291_v44 = vpop.f32.mrb[5].mxu1 }
 0x5d3   : > { %1561 = vtanh.f32 %v781_v43 }
 0x5dd   : > { %v1562_v45 = vpop.eup %1561 }
 0x5de   : > { %1325 = vmatmul.mubr.f32.vlgmr.msra.gmra.mrb[6].mxu0 %v1562_v45 }
 0x6b1   : > { %v871_v50 = vpop.f32.mrb[6].mxu0 }
 0x6b2   : > { %v872_v51 = vadd.f32 %v871_v50, %v804_v4  ;;  %v1326_v52 = vpop.f32.mrb[7].mxu0 }
 0x6b4   : > { %1360 = vmatmul.mubr.f32.vlgmr.msra.gmra.mrb[6].mxu1 %v872_v51 }
 0x787   : > { %v961_v55 = vpop.f32.mrb[6].mxu1 }
 0x788   : > { %v962_v56 = vadd.f32 %v961_v55, %v894_v54  ;;  %v1361_v57 = vpop.f32.mrb[7].mxu1 }
 0x78a   : > { %v967_v16 = vsel %vm257_vm4, %v1981_v1, %v962_v56 }
 0x78b   : > { %968 = vst [vmem:[%s1934_s23] sm:$0xff] %v967_v16 }
 0x78c   : > { %1662 = shalt.err (!%p1659_p10)
}
 0x78d   : > { %s1663_s29 = scalar_lea.hbm %s2034_s27, 128  ;;  %s1667_s21 = scalar_lea.hbm %s2084_s4, 1024 }
 0x78e   : > { %p1664_p13 = scmp.ne.s32.totalorder %s2034_s27, %s1663_s29  ;;  %p1668_p11 = scmp.lt.u32.totalorder %s2034_s27, %s2084_s4 }
 0x78f   : > { %p1669_p8 = scmp.lt.u32.totalorder %s1667_s21, %s1663_s29  ;;  %p1671_p1 = scmp.lt.u32.totalorder %s1663_s29, %s2034_s27 }
 0x790   : > { %p1665_p5 = pnand %p1664_p13, %p1871_p4 }
 0x791   : > { %p1670_p2 = por %p1669_p8, %p1668_p11 }
 0x792   : > { %p1666_p0 = pneg %p1665_p5 }
 0x793   : > { %p1672_p6 = por %p1671_p1, %p1670_p2 }
 0x795   : > { %p1673_p9 = pnand %p1672_p6, %p1666_p0 }
 0x797   : > { %1676 = shalt.err (!%p1673_p9)
}
 0x798   : > { %1486 = dma.vmem_to_hbm [thread:$0]  (%p1871_p4), %s2036_s11, 128, %s2034_s27, %s970_s20  }
 0x799 PF: > { %p1508_p12 = scmp.ge.s32.totalorder %s1719_s18, 2  ;;  %s995_s25 = sand.u32 1, %s1707_s15  }
 0x79a   : > { %p2100_p3 = scmp.ne.s32.totalorder %s2089_s22, 0  ;;  %s996_s5 = scalar_lea.sflag [#allocation5], %s995_s25 }
 0x79c   : > { %p1500_p7 = pnand %p1508_p12, %p2100_p3 }
 0x79e   : > { %1702 = dma.done.wait (!%p1500_p7), %s996_s5, 128  }
 0x79f   : > { %1704 = vsyncadd (!%p1500_p7), %s996_s5, 4294967168  ;;  %p18_p10 = scmp.ge.s32.totalorder %s1861_s9, 10   ;;  %s2101_s15 = smov %s1711_s16 }
 0x7a0   : > { %s2102_s16 = smov %s1715_s17  ;;  %s2103_s17 = smov %s1877_s13 }
 0x7a1   : > { %s2104_s18 = smov %s1861_s9  ;;  %20 = sbr.rel (!%p18_p10) target bundleno = 6 (0x6), region = 93 }
 0x7a8   :  { %1001 = vsyncpa [#allocation4], 1 }
 0x7a9   :  { %1003 = vsyncpa [#allocation4 + $0x1], 1 }
 0x7aa   :  { %1004 = vsyncpa [#allocation7], 1 }
 0x7ab   :  { %1005 = vsyncpa [#allocation5], 1 }
 0x7ac   :  { %1007 = vsyncpa [#allocation5 + $0x1], 1 }

</bundles_post_ra>
